<compile_context>
chip_gen: v5e
topology: v5e:2x2
jax: 0.10.0
libtpu: 0.0.40
codegen_flags: <defaults>
</compile_context>

<pallas_src>
import jax
import jax.numpy as jnp
from jax.experimental import pallas as pl
from jax.experimental.pallas import tpu as pltpu

HIDDEN = 4   # affine1: Linear(2, 4)
IN = 2       # input features
OUT = 2      # affine2: Linear(4, 2)


def policy_kernel(w1_ref, b1_ref, w2_ref, b2_ref, xT_ref, outT_ref):
    # xT_ref:  (IN,  TB) feature-major, lane-dense batch tile (VMEM)
    # outT_ref:(OUT, TB)
    # w1_ref (2,4), b1_ref (4,), w2_ref (4,2), b2_ref (2,) live in SMEM and
    # are read as scalars, broadcast on the VPU.
    xt = xT_ref[...]                     # (IN, TB) f32
    x0 = xt[0:1, :]                      # (1, TB)
    x1 = xt[1:2, :]                      # (1, TB)

    # Hidden layer: h_j = tanh(w1[0,j]*x0 + w1[1,j]*x1 + b1[j])
    # Fully unrolled (K=2) VPU broadcast-FMAs; tanh on the EUP slot.
    h = []
    for j in range(HIDDEN):
        h.append(jnp.tanh(w1_ref[0, j] * x0 + w1_ref[1, j] * x1 + b1_ref[j]))

    # Output layer: out_k = tanh(sum_j w2[j,k]*h_j + b2[k]), unrolled (K=4).
    outs = []
    for k in range(OUT):
        acc = b2_ref[k] + h[0] * w2_ref[0, k]
        acc = acc + h[1] * w2_ref[1, k]
        acc = acc + h[2] * w2_ref[2, k]
        acc = acc + h[3] * w2_ref[3, k]
        outs.append(jnp.tanh(acc))

    # Single unmasked lane-dense store of the whole (OUT, TB) tile.
    outT_ref[...] = jnp.concatenate(outs, axis=0)


def policy_forward(x, w1, b1, w2, b2, *, tb=512):
    """x: (B, 2) f32 (PyTorch layout).  w1: (2,4), b1: (4,), w2: (4,2), b2: (2,).

    Returns (B, 2) f32 = tanh(tanh(x @ w1 + b1) @ w2 + b2).
    """
    B, F = x.shape
    assert F == IN
    # Pad the batch up to a multiple of the lane tile (tb must be a multiple
    # of 128 so tiles are lane-dense and satisfy the (8,128) constraint).
    assert tb % 128 == 0
    Bp = ((B + tb - 1) // tb) * tb

    xT = jnp.transpose(x)                           # (2, B) feature-major
    if Bp != B:
        xT = jnp.pad(xT, ((0, 0), (0, Bp - B)))     # padded lanes are discarded

    smem = pl.BlockSpec(memory_space=pltpu.MemorySpace.SMEM)
    grid = (Bp // tb,)

    outT = pl.pallas_call(
        policy_kernel,
        out_shape=jax.ShapeDtypeStruct((OUT, Bp), jnp.float32),
        grid=grid,
        in_specs=[
            smem,                                        # w1 (2, 4)
            smem,                                        # b1 (4,)
            smem,                                        # w2 (4, 2)
            smem,                                        # b2 (2,)
            pl.BlockSpec((IN, tb), lambda i: (0, i)),    # xT batch tile
        ],
        out_specs=pl.BlockSpec((OUT, tb), lambda i: (0, i)),
        compiler_params=pltpu.CompilerParams(
            dimension_semantics=("parallel",)),
    )(w1, b1, w2, b2, xT)

    return jnp.transpose(outT[:, :B])                # back to (B, 2)


def init_params(key):
    # Matches torch.nn.init.normal_ (std-normal) on both weights and biases.
    k1, k2, k3, k4 = jax.random.split(key, 4)
    w1 = jax.random.normal(k1, (IN, HIDDEN), dtype=jnp.float32)   # (in=2, out=4)
    b1 = jax.random.normal(k2, (HIDDEN,), dtype=jnp.float32)
    w2 = jax.random.normal(k3, (HIDDEN, OUT), dtype=jnp.float32)  # (in=4, out=2)
    b2 = jax.random.normal(k4, (OUT,), dtype=jnp.float32)
    return w1, b1, w2, b2


if __name__ == "__main__":
    key = jax.random.PRNGKey(0)
    pkey, xkey = jax.random.split(key)

    w1, b1, w2, b2 = init_params(pkey)

    # Small-but-lane-dense batch: 256 observations, tb=128 -> grid of 2
    # (exercises the batch-tiled parallel pipeline).
    B = 256
    x = jax.random.normal(xkey, (B, IN), dtype=jnp.float32)

    out = policy_forward(x, w1, b1, w2, b2, tb=128)
    out = jax.block_until_ready(out)

    # Pure-JAX reference check of the same forward semantics.
    ref = jnp.tanh(jnp.tanh(x @ w1 + b1) @ w2 + b2)
    assert out.shape == (B, OUT)
    assert jnp.allclose(out, ref, atol=1e-5, rtol=1e-5)

    print("KERNEL_OK")
</pallas_src>

<mosaic_0001>
module attributes {stable_mosaic.version = 11 : i64} {
  func.func @policy_kernel(%arg0: i32, %arg1: memref<2x4xf32, #tpu.memory_space<smem>>, %arg2: memref<4xf32, #tpu.memory_space<smem>>, %arg3: memref<4x2xf32, #tpu.memory_space<smem>>, %arg4: memref<2xf32, #tpu.memory_space<smem>>, %arg5: memref<2x128xf32, #tpu.memory_space<vmem>>, %arg6: memref<2x128xf32, #tpu.memory_space<vmem>>) attributes {dimension_semantics = [#tpu.dimension_semantics<parallel>], iteration_bounds = array<i64: 2>, scalar_prefetch = 0 : i64, scratch_operands = 0 : i64, tpu.core_type = #tpu.core_type<tc>, window_params = [{transform_indices = @transform_0, window_bounds = array<i64: 2, 4>}, {transform_indices = @transform_1, window_bounds = array<i64: 4>}, {transform_indices = @transform_2, window_bounds = array<i64: 4, 2>}, {transform_indices = @transform_3, window_bounds = array<i64: 2>}, {transform_indices = @transform_4, window_bounds = array<i64: 2, 128>}, {transform_indices = @transform_5, window_bounds = array<i64: 2, 128>}]} {
    %c0 = arith.constant 0 : index
    %c0_0 = arith.constant 0 : index
    %0 = vector.load %arg5[%c0, %c0_0] : memref<2x128xf32, #tpu.memory_space<vmem>>, vector<2x128xf32>
    %1 = vector.extract_strided_slice %0 {offsets = [0, 0], sizes = [1, 128], strides = [1, 1]} : vector<2x128xf32> to vector<1x128xf32>
    %2 = vector.extract_strided_slice %0 {offsets = [1, 0], sizes = [1, 128], strides = [1, 1]} : vector<2x128xf32> to vector<1x128xf32>
    %c0_1 = arith.constant 0 : index
    %c0_2 = arith.constant 0 : index
    %3 = memref.load %arg1[%c0_1, %c0_2] : memref<2x4xf32, #tpu.memory_space<smem>>
    %4 = vector.broadcast %3 : f32 to vector<1x128xf32>
    %5 = arith.mulf %4, %1 : vector<1x128xf32>
    %c1 = arith.constant 1 : index
    %c0_3 = arith.constant 0 : index
    %6 = memref.load %arg1[%c1, %c0_3] : memref<2x4xf32, #tpu.memory_space<smem>>
    %7 = vector.broadcast %6 : f32 to vector<1x128xf32>
    %8 = arith.mulf %7, %2 : vector<1x128xf32>
    %9 = arith.addf %5, %8 : vector<1x128xf32>
    %c0_4 = arith.constant 0 : index
    %10 = memref.load %arg2[%c0_4] : memref<4xf32, #tpu.memory_space<smem>>
    %11 = vector.broadcast %10 : f32 to vector<1x128xf32>
    %12 = arith.addf %9, %11 : vector<1x128xf32>
    %13 = math.tanh %12 : vector<1x128xf32>
    %c0_5 = arith.constant 0 : index
    %c1_6 = arith.constant 1 : index
    %14 = memref.load %arg1[%c0_5, %c1_6] : memref<2x4xf32, #tpu.memory_space<smem>>
    %15 = vector.broadcast %14 : f32 to vector<1x128xf32>
    %16 = arith.mulf %15, %1 : vector<1x128xf32>
    %c1_7 = arith.constant 1 : index
    %c1_8 = arith.constant 1 : index
    %17 = memref.load %arg1[%c1_7, %c1_8] : memref<2x4xf32, #tpu.memory_space<smem>>
    %18 = vector.broadcast %17 : f32 to vector<1x128xf32>
    %19 = arith.mulf %18, %2 : vector<1x128xf32>
    %20 = arith.addf %16, %19 : vector<1x128xf32>
    %c1_9 = arith.constant 1 : index
    %21 = memref.load %arg2[%c1_9] : memref<4xf32, #tpu.memory_space<smem>>
    %22 = vector.broadcast %21 : f32 to vector<1x128xf32>
    %23 = arith.addf %20, %22 : vector<1x128xf32>
    %24 = math.tanh %23 : vector<1x128xf32>
    %c0_10 = arith.constant 0 : index
    %c2 = arith.constant 2 : index
    %25 = memref.load %arg1[%c0_10, %c2] : memref<2x4xf32, #tpu.memory_space<smem>>
    %26 = vector.broadcast %25 : f32 to vector<1x128xf32>
    %27 = arith.mulf %26, %1 : vector<1x128xf32>
    %c1_11 = arith.constant 1 : index
    %c2_12 = arith.constant 2 : index
    %28 = memref.load %arg1[%c1_11, %c2_12] : memref<2x4xf32, #tpu.memory_space<smem>>
    %29 = vector.broadcast %28 : f32 to vector<1x128xf32>
    %30 = arith.mulf %29, %2 : vector<1x128xf32>
    %31 = arith.addf %27, %30 : vector<1x128xf32>
    %c2_13 = arith.constant 2 : index
    %32 = memref.load %arg2[%c2_13] : memref<4xf32, #tpu.memory_space<smem>>
    %33 = vector.broadcast %32 : f32 to vector<1x128xf32>
    %34 = arith.addf %31, %33 : vector<1x128xf32>
    %35 = math.tanh %34 : vector<1x128xf32>
    %c0_14 = arith.constant 0 : index
    %c3 = arith.constant 3 : index
    %36 = memref.load %arg1[%c0_14, %c3] : memref<2x4xf32, #tpu.memory_space<smem>>
    %37 = vector.broadcast %36 : f32 to vector<1x128xf32>
    %38 = arith.mulf %37, %1 : vector<1x128xf32>
    %c1_15 = arith.constant 1 : index
    %c3_16 = arith.constant 3 : index
    %39 = memref.load %arg1[%c1_15, %c3_16] : memref<2x4xf32, #tpu.memory_space<smem>>
    %40 = vector.broadcast %39 : f32 to vector<1x128xf32>
    %41 = arith.mulf %40, %2 : vector<1x128xf32>
    %42 = arith.addf %38, %41 : vector<1x128xf32>
    %c3_17 = arith.constant 3 : index
    %43 = memref.load %arg2[%c3_17] : memref<4xf32, #tpu.memory_space<smem>>
    %44 = vector.broadcast %43 : f32 to vector<1x128xf32>
    %45 = arith.addf %42, %44 : vector<1x128xf32>
    %46 = math.tanh %45 : vector<1x128xf32>
    %c0_18 = arith.constant 0 : index
    %47 = memref.load %arg4[%c0_18] : memref<2xf32, #tpu.memory_space<smem>>
    %c0_19 = arith.constant 0 : index
    %c0_20 = arith.constant 0 : index
    %48 = memref.load %arg3[%c0_19, %c0_20] : memref<4x2xf32, #tpu.memory_space<smem>>
    %49 = vector.broadcast %48 : f32 to vector<1x128xf32>
    %50 = arith.mulf %13, %49 : vector<1x128xf32>
    %51 = vector.broadcast %47 : f32 to vector<1x128xf32>
    %52 = arith.addf %51, %50 : vector<1x128xf32>
    %c1_21 = arith.constant 1 : index
    %c0_22 = arith.constant 0 : index
    %53 = memref.load %arg3[%c1_21, %c0_22] : memref<4x2xf32, #tpu.memory_space<smem>>
    %54 = vector.broadcast %53 : f32 to vector<1x128xf32>
    %55 = arith.mulf %24, %54 : vector<1x128xf32>
    %56 = arith.addf %52, %55 : vector<1x128xf32>
    %c2_23 = arith.constant 2 : index
    %c0_24 = arith.constant 0 : index
    %57 = memref.load %arg3[%c2_23, %c0_24] : memref<4x2xf32, #tpu.memory_space<smem>>
    %58 = vector.broadcast %57 : f32 to vector<1x128xf32>
    %59 = arith.mulf %35, %58 : vector<1x128xf32>
    %60 = arith.addf %56, %59 : vector<1x128xf32>
    %c3_25 = arith.constant 3 : index
    %c0_26 = arith.constant 0 : index
    %61 = memref.load %arg3[%c3_25, %c0_26] : memref<4x2xf32, #tpu.memory_space<smem>>
    %62 = vector.broadcast %61 : f32 to vector<1x128xf32>
    %63 = arith.mulf %46, %62 : vector<1x128xf32>
    %64 = arith.addf %60, %63 : vector<1x128xf32>
    %65 = math.tanh %64 : vector<1x128xf32>
    %c1_27 = arith.constant 1 : index
    %66 = memref.load %arg4[%c1_27] : memref<2xf32, #tpu.memory_space<smem>>
    %c0_28 = arith.constant 0 : index
    %c1_29 = arith.constant 1 : index
    %67 = memref.load %arg3[%c0_28, %c1_29] : memref<4x2xf32, #tpu.memory_space<smem>>
    %68 = vector.broadcast %67 : f32 to vector<1x128xf32>
    %69 = arith.mulf %13, %68 : vector<1x128xf32>
    %70 = vector.broadcast %66 : f32 to vector<1x128xf32>
    %71 = arith.addf %70, %69 : vector<1x128xf32>
    %c1_30 = arith.constant 1 : index
    %c1_31 = arith.constant 1 : index
    %72 = memref.load %arg3[%c1_30, %c1_31] : memref<4x2xf32, #tpu.memory_space<smem>>
    %73 = vector.broadcast %72 : f32 to vector<1x128xf32>
    %74 = arith.mulf %24, %73 : vector<1x128xf32>
    %75 = arith.addf %71, %74 : vector<1x128xf32>
    %c2_32 = arith.constant 2 : index
    %c1_33 = arith.constant 1 : index
    %76 = memref.load %arg3[%c2_32, %c1_33] : memref<4x2xf32, #tpu.memory_space<smem>>
    %77 = vector.broadcast %76 : f32 to vector<1x128xf32>
    %78 = arith.mulf %35, %77 : vector<1x128xf32>
    %79 = arith.addf %75, %78 : vector<1x128xf32>
    %c3_34 = arith.constant 3 : index
    %c1_35 = arith.constant 1 : index
    %80 = memref.load %arg3[%c3_34, %c1_35] : memref<4x2xf32, #tpu.memory_space<smem>>
    %81 = vector.broadcast %80 : f32 to vector<1x128xf32>
    %82 = arith.mulf %46, %81 : vector<1x128xf32>
    %83 = arith.addf %79, %82 : vector<1x128xf32>
    %84 = math.tanh %83 : vector<1x128xf32>
    %85 = tpu.concatenate %65, %84 in 0 : vector<1x128xf32>, vector<1x128xf32> -> vector<2x128xf32>
    %c0_36 = arith.constant 0 : index
    %c0_37 = arith.constant 0 : index
    %86 = vector.load %arg6[%c0_36, %c0_37] : memref<2x128xf32, #tpu.memory_space<vmem>>, vector<2x128xf32>
    tpu.vector_store %arg6[%c0_36, %c0_37], %85 {strides = array<i32>} : memref<2x128xf32, #tpu.memory_space<vmem>>, vector<2x128xf32>,
    return
  }
  func.func @transform_0(%arg0: i32) -> (i32, i32) {
    %c0_i32 = arith.constant 0 : i32
    %c0_i32_0 = arith.constant 0 : i32
    %c0_i32_1 = arith.constant 0 : i32
    return %c0_i32, %c0_i32_0 : i32, i32
  }
  func.func @transform_1(%arg0: i32) -> i32 {
    %c0_i32 = arith.constant 0 : i32
    %c0_i32_0 = arith.constant 0 : i32
    return %c0_i32 : i32
  }
  func.func @transform_2(%arg0: i32) -> (i32, i32) {
    %c0_i32 = arith.constant 0 : i32
    %c0_i32_0 = arith.constant 0 : i32
    %c0_i32_1 = arith.constant 0 : i32
    return %c0_i32, %c0_i32_0 : i32, i32
  }
  func.func @transform_3(%arg0: i32) -> i32 {
    %c0_i32 = arith.constant 0 : i32
    %c0_i32_0 = arith.constant 0 : i32
    return %c0_i32 : i32
  }
  func.func @transform_4(%arg0: i32) -> (i32, i32) {
    %c0_i32 = arith.constant 0 : i32
    %c0_i32_0 = arith.constant 0 : i32
    return %c0_i32, %arg0 : i32, i32
  }
  func.func @transform_5(%arg0: i32) -> (i32, i32) {
    %c0_i32 = arith.constant 0 : i32
    %c0_i32_0 = arith.constant 0 : i32
    return %c0_i32, %arg0 : i32, i32
  }
}

</mosaic_0001>

<bundles_post_ra>
// kernel: tpu_custom_call.1
= control target key start
LH: loop header
LB: loop body
LE: loop exit
PB: predicated region body
PF: predicated region fallthrough
CT: control target
= control target key end

     0   :  { %10 = vsyncpa [#allocation4], 0  ;;  %s931_s0 = inlined_call_operand.vmem [shape: f32[2,4], index: 0, kind: input, shape index: {}]   ;;  %s932_s1 = inlined_call_operand.vmem [shape: f32[4], index: 1, kind: input, shape index: {}]   ;;  %s933_s2 = inlined_call_operand.vmem [shape: f32[4,2], index: 2, kind: input, shape index: {}]   ;;  %s934_s3 = inlined_call_operand.vmem [shape: f32[2], index: 3, kind: input, shape index: {}]   ;;  %s935_s4 = inlined_call_operand.vmem [shape: f32[2,256], index: 4, kind: input, shape index: {}]   ;;  %s936_s5 = inlined_call_operand.hbm [shape: f32[2,256], index: 5, kind: output, shape index: {}]  }
   0x1   :  { %11 = vsyncpa [#allocation6], 0 }
   0x2   :  { %12 = vsyncpa [#allocation9], 0 }
   0x3   :  { %13 = vsyncpa [#allocation3], 0 }
   0x4   :  { %15 = vsyncpa [#allocation3 + $0x1], 0  ;;  %s787_s18 = smov 0   ;;  %s789_s19 = smov 0  }
   0x5   :  { %s791_s20 = smov 0   ;;  %s793_s21 = smov 0  }
   0x6 LB: > { %s808_s22 = sadd.s32 4294967295, %s751_s21   ;;  %s489_s23 = sadd.s32 4294967294, %s751_s21   ;;  %s751_s21 = sphi %s793_s21, %s943_s21   ;;  %s747_s20 = sphi %s791_s20, %s942_s20   ;;  %s743_s19 = sphi %s789_s19, %s941_s19   ;;  %s739_s18 = sphi %s787_s18, %s940_s18  }
   0x7   : > { %s812_s24 = sadd.s32 1, %s751_s21   ;;  %s138_s25 = sadd.s32 1, %s747_s20 }
   0x8   : > { %s135_s26 = ssub.s32 %s751_s21, %s812_s24  ;;  %p148_p0 = scmp.ne.s32.totalorder %s747_s20, %s743_s19 }
   0x9   : > { %p136_p1 = scmp.eq.s32.totalorder %s135_s26, 0  ;;  %p149_p2 = scmp.eq.s32.totalorder %s808_s22, 1 }
   0xa   : > { %p154_p3 = scmp.ne.s32.totalorder %s743_s19, %s739_s18  ;;  %p155_p4 = scmp.eq.s32.totalorder %s489_s23, 1 }
   0xb   : > { %s823_s27 = scalar_select %p136_p1, %s747_s20, %s138_s25  }
   0xc   : > { %p825_p5 = por %p149_p2, %p148_p0  ;;  %p829_p6 = por %p155_p4, %p154_p3 }
   0xd   : > { %p490_p7 = scmp.ge.s32.totalorder %s751_s21, 1  ;;  %p162_p8 = scmp.lt.s32.totalorder %s751_s21, 3 }
   0xe   : > { %p560_p9 = scmp.eq.s32.totalorder %s808_s22, 0  ;;  %s184_s8 = sshll.u32 %s932_s1, 4  ;;  %s185_s8 = int_to_ptr.vmem [resolvable:$true] %s184_s8 }
   0xf   : > { %p836_p10 = pnand %p490_p7, %p162_p8  ;;  %s174_s11 = sshll.u32 %s931_s0, 4  ;;  %s175_s11 = int_to_ptr.vmem [resolvable:$true] %s174_s11 }
  0x10   : > { %s194_s14 = sshll.u32 %s933_s2, 4  ;;  %s204_s17 = sshll.u32 %s934_s3, 4  ;;  %s195_s14 = int_to_ptr.vmem [resolvable:$true] %s194_s14  ;;  %s205_s17 = int_to_ptr.vmem [resolvable:$true] %s204_s17 }
  0x11   : > { %p543_p11 = pneg %p836_p10  ;;  %s753_s23 = smov [#allocation5]  }
  0x12   : > { %s754_s25 = smov [#allocation2]   ;;  %s755_s26 = smov [#allocation7]  }
  0x13   : > { %p544_p12 = pnand %p560_p9, %p543_p11  ;;  %s756_s6 = smov [#allocation8]  }
  0x14   : > { %224 = sbr.rel (%p836_p10) target bundleno = 83 (0x53), region = 40 }
  0x15   : > { %549 = dma.vmem_to_smem (!%p544_p12), %s185_s8, 16, %s753_s23, [#allocation6]  }
  0x16   : > { %546 = dma.vmem_to_smem (!%p544_p12), %s175_s11, 32, %s754_s25, [#allocation4]  }
  0x17   : > { %552 = dma.vmem_to_smem (!%p544_p12), %s195_s14, 64, %s755_s26, [#allocation6]  }
  0x18   : > { %555 = dma.vmem_to_smem (!%p544_p12), %s205_s17, 16, %s756_s6, [#allocation9]  }
  0x19   : > { %722 = dma.done.wait (%p560_p9), [#allocation4], 32  }
  0x1a   : > { %724 = vsyncadd (%p560_p9), [#allocation4], 4294967264 }
  0x1b   : > { %726 = dma.done.wait (%p560_p9), [#allocation6], 80  }
  0x1c   : > { %728 = vsyncadd (%p560_p9), [#allocation6], 4294967216 }
  0x1d   : > { %730 = dma.done.wait (%p560_p9), [#allocation9], 16  }
  0x1e   : > { %732 = vsyncadd (%p560_p9), [#allocation9], 4294967280 }
  0x1f   : > { %246 = sfence }
  0x20   : > { %p268_p13 = scmp.lt.s32.totalorder %s808_s22, 1  ;;  %s273_s30 = sld [smem:[#allocation2]]  ;;  %vm370_vm0 = vcmask 1040384  }
  0x21   : > { %s503_s7 = sld [smem:[#allocation2 + $0x80]] }
  0x22   : > { %s269_s8 = scalar_select %p268_p13, %s808_s22, 1 }
  0x23   : > { %s283_s9 = sld [smem:[#allocation5]] }
  0x24   : > { %s502_s10 = sshll.u32 %s269_s8, 1  ;;  %s504_s11 = sld [smem:[#allocation2 + $0x1]] }
  0x25   : > { %s271_s14 = scalar_lea.vmem %s935_s4, %s502_s10  ;;  %s505_s15 = sld [smem:[#allocation2 + $0x81]] }
  0x26   : > { %v272_v0 = vld [vmem:[%s271_s14] sm:$0x3]  ;;  %v274_v1 = vstv %s273_s30  ;;  %s875_s16 = sld [smem:[#allocation5 + $0x1]] }
  0x27   : > { %v277_v2 = vstv %s503_s7  ;;  %s507_s17 = sld [smem:[#allocation2 + $0x2]]  ;;  %v275_v3 = vmul.f32 %v274_v1, %v272_v0 }
  0x28   : > { %v278_v4 = vmul.f32 %v277_v2, %v272_v0  ;;  %s508_s23 = sld [smem:[#allocation2 + $0x82]] }
  0x29   : > { %s877_s25 = sld [smem:[#allocation5 + $0x2]]  ;;  %v284_v7 = vstv %s283_s9 }
  0x2a   : > { %v280_v5 = vrot.slane %v278_v4, 1  ;;  %v288_v6 = vstv %s504_s11  ;;  %s510_s26 = sld [smem:[#allocation2 + $0x3]] }
  0x2b   : > { %v291_v8 = vstv %s505_s15  ;;  %s511_s6 = sld [smem:[#allocation2 + $0x83]]  ;;  %v289_v10 = vmul.f32 %v288_v6, %v272_v0 }
  0x2c   : > { %v282_v9 = vadd.f32 %v280_v5, %v275_v3  ;;  %v292_v11 = vmul.f32 %v291_v8, %v272_v0  ;;  %s879_s30 = sld [smem:[#allocation5 + $0x3]]  ;;  %v298_v16 = vstv %s875_s16 }
  0x2d   : > { %v302_v12 = vstv %s507_s17  ;;  %s881_s7 = sld [smem:[#allocation8]]  ;;  %s265_s17 = sand.u32 1, %s743_s19  }
  0x2e   : > { %v285_v13 = vadd.f32 %v284_v7, %v282_v9  ;;  %v294_v14 = vrot.slane %v292_v11, 1  ;;  %v305_v15 = vstv %s508_s23  ;;  %s883_s8 = sld [smem:[#allocation7]]  ;;  %v303_v17 = vmul.f32 %v302_v12, %v272_v0  ;;  %s501_s23 = sshll.u32 %s265_s17, 1 }
  0x2f   : > { %v306_v18 = vmul.f32 %v305_v15, %v272_v0  ;;  %s886_s9 = sld [smem:[#allocation7 + $0x80]]  ;;  %v312_v24 = vstv %s877_s25  ;;  %s522_s25 = sshll.u32 %s808_s22, 1 }
  0x30   : > { %605 = vtanh.f32 %v285_v13  ;;  %v296_v19 = vadd.f32 %v294_v14, %v289_v10  ;;  %v316_v20 = vstv %s510_s26  ;;  %s888_s10 = sld [smem:[#allocation7 + $0x100]] }
  0x31   : > { %v308_v21 = vrot.slane %v306_v18, 1  ;;  %v319_v22 = vstv %s511_s6  ;;  %s890_s11 = sld [smem:[#allocation7 + $0x180]]  ;;  %v317_v25 = vmul.f32 %v316_v20, %v272_v0 }
  0x32   : > { %v299_v23 = vadd.f32 %v298_v16, %v296_v19  ;;  %v320_v26 = vmul.f32 %v319_v22, %v272_v0  ;;  %s516_s12 = sld [smem:[#allocation8 + $0x1]]  ;;  %v326_v31 = vstv %s879_s30  ;;  %s384_s30 = scalar_lea.hbm %s936_s5, %s522_s25 }
  0x33   : > { %v310_v27 = vadd.f32 %v308_v21, %v303_v17  ;;  %s517_s13 = sld [smem:[#allocation7 + $0x1]]  ;;  %v333_v34 = vstv %s881_s7  ;;  %s267_s7 = scalar_lea.vmem [#allocation10], %s501_s23 }
  0x34   : > { %607 = vtanh.f32 %v299_v23  ;;  %v322_v28 = vrot.slane %v320_v26, 1  ;;  %v331_v29 = vstv %s883_s8  ;;  %s518_s14 = sld [smem:[#allocation7 + $0x81]]  ;;  %s386_s8 = sshll.u32 %s267_s7, 4  ;;  %s387_s8 = int_to_ptr.vmem [resolvable:$true] %s386_s8 }
  0x35   : > { %v313_v30 = vadd.f32 %v312_v24, %v310_v27  ;;  %s519_s15 = sld [smem:[#allocation7 + $0x101]]  ;;  %v336_v37 = vstv %s886_s9  ;;  %s388_s9 = sshll.u32 %s384_s30, 4  ;;  %s389_s9 = int_to_ptr.hbm [resolvable:$true] %s388_s9 }
  0x36   : > { %v606_v32 = vpop.eup %605  ;;  %v324_v33 = vadd.f32 %v322_v28, %v317_v25  ;;  %s520_s16 = sld [smem:[#allocation7 + $0x181]]  ;;  %v340_v45 = vstv %s888_s10  ;;  %s374_s10 = scalar_lea.sflag [#allocation3], %s265_s17 }
  0x37   : > { %609 = vtanh.f32 %v313_v30  ;;  %v332_v35 = vmul.f32 %v606_v32, %v331_v29  ;;  %v344_v51 = vstv %s890_s11  ;;  %s691_s11 = sshra.s32 %s389_s9, 4  ;;  %s692_s11 = int_to_ptr.hbm [resolvable:$true] %s691_s11 }
  0x38   : > { %v327_v36 = vadd.f32 %v326_v31, %v324_v33  ;;  %v352_v40 = vstv %s516_s12  ;;  %s693_s22 = scalar_lea.hbm %s692_s11, 2  ;;  %p698_p3 = scmp.lt.s32.totalorder %s692_s11, %s936_s5 }
  0x39   : > { %v334_v38 = vadd.f32 %v333_v34, %v332_v35  ;;  %v350_v39 = vstv %s517_s13  ;;  %p694_p0 = scmp.ne.s32.totalorder %s692_s11, %s693_s22 }
  0x3a   : > { %v608_v41 = vpop.eup %607  ;;  %611 = vtanh.f32 %v327_v36  ;;  %v351_v42 = vmul.f32 %v606_v32, %v350_v39  ;;  %v355_v43 = vstv %s518_s14  ;;  %s697_s14 = scalar_lea.hbm %s936_s5, 4 }
  0x3b   : > { %v337_v44 = vmul.f32 %v608_v41, %v336_v37  ;;  %v356_v46 = vmul.f32 %v608_v41, %v355_v43  ;;  %v359_v47 = vstv %s519_s15  ;;  %p695_p1 = pnand %p694_p0, %p825_p5  ;;  %p699_p4 = scmp.lt.s32.totalorder %s697_s14, %s693_s22 }
  0x3c   : > { %v353_v48 = vadd.f32 %v352_v40, %v351_v42  ;;  %v363_v55 = vstv %s520_s16 }
  0x3d   : > { %v610_v49 = vpop.eup %609  ;;  %v338_v50 = vadd.f32 %v337_v44, %v334_v38  ;;  %p696_p2 = pneg %p695_p1  ;;  %p700_p7 = por %p699_p4, %p698_p3 }
  0x3e   : > { %v341_v52 = vmul.f32 %v610_v49, %v340_v45  ;;  %v357_v53 = vadd.f32 %v356_v46, %v353_v48  ;;  %v360_v54 = vmul.f32 %v610_v49, %v359_v47 }
  0x3f   : > { %p701_p8 = pnand %p700_p7, %p696_p2 }
  0x40   : > { %v612_v56 = vpop.eup %611  ;;  %v342_v57 = vadd.f32 %v341_v52, %v338_v50  ;;  %v361_v58 = vadd.f32 %v360_v54, %v357_v53 }
  0x41   : > { %v345_v59 = vmul.f32 %v612_v56, %v344_v51  ;;  %v364_v60 = vmul.f32 %v612_v56, %v363_v55 }
  0x43   : > { %v346_v61 = vadd.f32 %v345_v59, %v342_v57  ;;  %v365_v62 = vadd.f32 %v364_v60, %v361_v58 }
  0x45   : > { %613 = vtanh.f32 %v346_v61 }
  0x46   : > { %615 = vtanh.f32 %v365_v62 }
  0x4b   : > { %v614_v63 = vpop.eup %613 }
  0x4c   : > { %v616_v0 = vpop.eup %615 }
  0x4d   : > { %v368_v1 = vrot.slane %v616_v0, 7 }
  0x4f   : > { %v371_v2 = vsel %vm370_vm0, %v614_v63, %v368_v1 }
  0x50   : > { %372 = vst [vmem:[%s267_s7] sm:$0x3] %v371_v2 }
  0x51   : > { %704 = shalt.err (!%p701_p8)
}
  0x52   : > { %541 = dma.vmem_to_hbm [thread:$0]  (%p825_p5), %s387_s8, 32, %s389_s9, %s374_s10  }
  0x53 PF: > { %p568_p9 = scmp.ge.s32.totalorder %s751_s21, 2  ;;  %s400_s17 = sand.u32 1, %s739_s18  }
  0x54   : > { %s401_s23 = scalar_lea.sflag [#allocation3], %s400_s17 }
  0x55   : > { %p557_p10 = pnand %p568_p9, %p829_p6 }
  0x57   : > { %p558_p11 = pneg %p557_p10 }
  0x59   : > { %734 = dma.done.wait (%p558_p11), %s401_s23, 32  }
  0x5a   : > { %736 = vsyncadd (%p558_p11), %s401_s23, 4294967264  ;;  %p18_p12 = scmp.ge.s32.totalorder %s812_s24, 4   ;;  %s940_s18 = smov %s743_s19 }
  0x5b   : > { %s941_s19 = smov %s747_s20  ;;  %s942_s20 = smov %s823_s27 }
  0x5c   : > { %s943_s21 = smov %s812_s24  ;;  %20 = sbr.rel (!%p18_p12) target bundleno = 6 (0x6), region = 92 }
  0x61   :  { %407 = vsyncpa [#allocation3], 1 }
  0x62   :  { %409 = vsyncpa [#allocation3 + $0x1], 1 }
  0x63   :  { %410 = vsyncpa [#allocation4], 1 }
  0x64   :  { %412 = vsyncpa [#allocation4 + $0x1], 1 }
  0x65   :  { %413 = vsyncpa [#allocation6], 1 }
  0x66   :  { %414 = vsyncpa [#allocation9], 1 }

</bundles_post_ra>
